<compile_context>
chip_gen: v7x
topology: tpu7x:2x2x1
jax: 0.10.0
libtpu: 0.0.40
codegen_flags: <defaults>
</compile_context>

<pallas_src>
import jax
import jax.numpy as jnp
from jax.experimental import pallas as pl
from jax.experimental.pallas import tpu as pltpu


def _deconv_tap_kernel(tap_ref, x_ref, w_ref, b_ref, o_ref):
    # tap_ref: (1, tS)   int32   tap id (ki*2 + kj) of each output column
    # x_ref:   (1, Cin, tS)      NN-upsampled input, output-spatial flat on lanes
    # w_ref:   (4, Cout, Cin)    per-tap weight matrices
    # b_ref:   (Cout, 1)         bias
    # o_ref:   (1, Cout, tS)     output, spatial flat on lanes (NCHW-contiguous)
    xb = x_ref[0]                                   # (Cin, tS)
    tap = tap_ref[...]                              # (1, tS)

    # Four tiny MXU GEMMs (contraction over Cin), selected per output column by its tap
    # parity.  MXU is nowhere near the bottleneck here (mem-bound op); the selects are
    # cheap VPU work and keep every load/store lane-dense.
    acc = jnp.dot(w_ref[0], xb, preferred_element_type=jnp.float32)      # (Cout, tS)
    for t in (1, 2, 3):
        y = jnp.dot(w_ref[t], xb, preferred_element_type=jnp.float32)
        acc = jnp.where(tap == t, y, acc)

    o_ref[0] = (acc + b_ref[...]).astype(o_ref.dtype)


def _choose_tile(s4, cin, cout):
    """Pick the spatial tile (lane) width and a VMEM limit, generation-aware."""
    try:
        vmem_cap = int(pltpu.get_tpu_info().vmem_capacity_bytes)
    except Exception:  # pragma: no cover - conservative fallback
        vmem_cap = 64 * 1024 * 1024
    vmem_limit = max(16 * 1024 * 1024, min(vmem_cap // 2, 64 * 1024 * 1024))
    budget = vmem_limit // 2                        # headroom for mosaic scratch etc.

    cin_p = ((cin + 7) // 8) * 8
    cout_p = ((cout + 7) // 8) * 8
    per_col = 2 * 4 * (cin_p + cout_p + 8)          # dbl-buffered x + out + tap, 4B each

    ts = min(8192, max(128, budget // per_col))
    ts = (ts // 128) * 128
    if s4 <= ts:
        ts = s4                                     # full extent is always a legal block
    return ts, vmem_limit


@jax.jit
def upsample_deconv2x(x, weight, bias):
    """ConvTranspose2d(kernel_size=2, stride=2) forward.

    x:      (N, Cin, H, W)     float32 (NCHW, matches PyTorch)
    weight: (Cin, Cout, 2, 2)  float32 (PyTorch ConvTranspose2d layout)
    bias:   (Cout,)            float32
    returns (N, Cout, 2H, 2W)  float32
    """
    N, Cin, H, W = x.shape
    Cout = weight.shape[1]
    S4 = 4 * H * W                                  # flattened output spatial (2H * 2W)

    ts, vmem_limit = _choose_tile(S4, Cin, Cout)
    if N == 1 and ts == S4 and S4 >= 256:
        half = ((S4 // 2) // 128) * 128
        if half >= 128:
            ts = half                               # keep >=2 grid steps (v7x: 2 TCs)
    n_s = pl.cdiv(S4, ts)

    # Nearest-neighbour 2x upsample of the input (input-sized, output-coalesced XLA op);
    # the reshape to flat spatial is free.
    x_up = jnp.repeat(jnp.repeat(x, 2, axis=2), 2, axis=3).reshape(N, Cin, S4)

    # Per-tap weight matrices: w_taps[ki*2+kj, co, ci] = weight[ci, co, ki, kj].
    w_taps = jnp.transpose(weight, (2, 3, 1, 0)).reshape(4, Cout, Cin)
    b_col = bias.reshape(Cout, 1)

    # Tap id of every output pixel, in flattened (2H, 2W) row-major order.
    r = jnp.arange(2 * H, dtype=jnp.int32).reshape(-1, 1)
    c = jnp.arange(2 * W, dtype=jnp.int32).reshape(1, -1)
    tap = ((r % 2) * 2 + (c % 2)).reshape(1, S4)

    out_flat = pl.pallas_call(
        _deconv_tap_kernel,
        out_shape=jax.ShapeDtypeStruct((N, Cout, S4), x.dtype),
        grid_spec=pltpu.PrefetchScalarGridSpec(
            num_scalar_prefetch=0,
            grid=(N, n_s),
            in_specs=[
                pl.BlockSpec((1, ts), lambda n, j: (0, j)),            # tap map
                pl.BlockSpec((1, Cin, ts), lambda n, j: (n, 0, j)),    # upsampled x
                pl.BlockSpec((4, Cout, Cin), lambda n, j: (0, 0, 0)),  # weights (invariant)
                pl.BlockSpec((Cout, 1), lambda n, j: (0, 0)),          # bias (invariant)
            ],
            out_specs=pl.BlockSpec((1, Cout, ts), lambda n, j: (n, 0, j)),
        ),
        compiler_params=pltpu.CompilerParams(
            dimension_semantics=("parallel", "parallel"),
            vmem_limit_bytes=vmem_limit,
        ),
    )(tap, x_up, w_taps, b_col)

    # (N, Cout, 4*H*W) is already NCHW-contiguous: the reshape is free (no transpose).
    return out_flat.reshape(N, Cout, 2 * H, 2 * W)


def _reference_deconv2x(x, weight, bias):
    # Pure-JAX reference of ConvTranspose2d(k=2, s=2):
    # out[n, co, 2i+ki, 2j+kj] = sum_ci x[n,ci,i,j] * W[ci,co,ki,kj] + b[co]
    out = jnp.einsum("ncij,cokl->noikjl", x, weight)
    N, Cout, H, _, W, _ = out.shape
    out = out.reshape(N, Cout, 2 * H, 2 * W)
    return out + bias[None, :, None, None]


if __name__ == "__main__":
    key = jax.random.PRNGKey(0)
    k_x, k_w, k_b = jax.random.split(key, 3)

    N, Cin, Cout, H, W = 2, 4, 8, 16, 16

    # Deterministic parameter init (roughly matches PyTorch's uniform init scale).
    fan_in = Cout * 2 * 2
    bound = 1.0 / (fan_in ** 0.5)
    weight = jax.random.uniform(k_w, (Cin, Cout, 2, 2), jnp.float32, -bound, bound)
    bias = jax.random.uniform(k_b, (Cout,), jnp.float32, -bound, bound)
    x = jax.random.normal(k_x, (N, Cin, H, W), jnp.float32)

    out = upsample_deconv2x(x, weight, bias)
    out = jax.block_until_ready(out)

    ref = _reference_deconv2x(x, weight, bias)
    assert out.shape == (N, Cout, 2 * H, 2 * W), out.shape
    assert jnp.allclose(out, ref, atol=1e-5, rtol=1e-5), "mismatch vs reference"

    print("KERNEL_OK")
</pallas_src>

<mosaic_0001>
module attributes {stable_mosaic.version = 11 : i64} {
  func.func @_deconv_tap_kernel(%arg0: i32, %arg1: i32, %arg2: memref<1x1024xi32, #tpu.memory_space<vmem>>, %arg3: memref<1x4x1024xf32, #tpu.memory_space<vmem>>, %arg4: memref<4x8x4xf32, #tpu.memory_space<vmem>>, %arg5: memref<8x1xf32, #tpu.memory_space<vmem>>, %arg6: memref<1x8x1024xf32, #tpu.memory_space<vmem>>) attributes {dimension_semantics = [#tpu.dimension_semantics<parallel>, #tpu.dimension_semantics<parallel>], iteration_bounds = array<i64: 2, 1>, scalar_prefetch = 0 : i64, scratch_operands = 0 : i64, tpu.core_type = #tpu.core_type<tc>, window_params = [{transform_indices = @transform_0, window_bounds = array<i64: 1, 1024>}, {transform_indices = @transform_1, window_bounds = array<i64: 1, 4, 1024>}, {pipeline_mode = #tpu.pipeline_mode<synchronous>, transform_indices = @transform_2, window_bounds = array<i64: 4, 8, 4>}, {pipeline_mode = #tpu.pipeline_mode<synchronous>, transform_indices = @transform_3, window_bounds = array<i64: 8, 1>}, {transform_indices = @transform_4, window_bounds = array<i64: 1, 8, 1024>}]} {
    %c0 = arith.constant 0 : index
    %c0_0 = arith.constant 0 : index
    %c0_1 = arith.constant 0 : index
    %0 = vector.load %arg3[%c0, %c0_0, %c0_1] : memref<1x4x1024xf32, #tpu.memory_space<vmem>>, vector<1x4x1024xf32>
    %1 = vector.shape_cast %0 : vector<1x4x1024xf32> to vector<4x1024xf32>
    %c0_2 = arith.constant 0 : index
    %c0_3 = arith.constant 0 : index
    %2 = vector.load %arg2[%c0_2, %c0_3] : memref<1x1024xi32, #tpu.memory_space<vmem>>, vector<1x1024xi32>
    %c0_4 = arith.constant 0 : index
    %c0_5 = arith.constant 0 : index
    %c0_6 = arith.constant 0 : index
    %3 = vector.load %arg4[%c0_4, %c0_5, %c0_6] : memref<4x8x4xf32, #tpu.memory_space<vmem>>, vector<1x8x4xf32>
    %4 = vector.shape_cast %3 : vector<1x8x4xf32> to vector<8x4xf32>
    %cst = arith.constant dense<0.000000e+00> : vector<8x1024xf32>
    %5 = tpu.matmul %4, %1, %cst {dimension_numbers = #tpu.dot_dimension_numbers<[1], [0], [0], [1], [0, 0, 1, 1], [], []>} : vector<8x4xf32>, vector<4x1024xf32>, vector<8x1024xf32> -> vector<8x1024xf32>
    %c1 = arith.constant 1 : index
    %c0_7 = arith.constant 0 : index
    %c0_8 = arith.constant 0 : index
    %6 = vector.load %arg4[%c1, %c0_7, %c0_8] : memref<4x8x4xf32, #tpu.memory_space<vmem>>, vector<1x8x4xf32>
    %7 = vector.shape_cast %6 : vector<1x8x4xf32> to vector<8x4xf32>
    %cst_9 = arith.constant dense<0.000000e+00> : vector<8x1024xf32>
    %8 = tpu.matmul %7, %1, %cst_9 {dimension_numbers = #tpu.dot_dimension_numbers<[1], [0], [0], [1], [0, 0, 1, 1], [], []>} : vector<8x4xf32>, vector<4x1024xf32>, vector<8x1024xf32> -> vector<8x1024xf32>
    %c1_i32 = arith.constant 1 : i32
    %9 = vector.broadcast %c1_i32 : i32 to vector<1x1024xi32>
    %10 = arith.cmpi eq, %2, %9 : vector<1x1024xi32>
    %11 = vector.shape_cast %10 : vector<1x1024xi1> to vector<1x1024xi1>
    %12 = vector.broadcast %11 : vector<1x1024xi1> to vector<8x1024xi1>
    %13 = arith.select %12, %8, %5 : vector<8x1024xi1>, vector<8x1024xf32>
    %c2 = arith.constant 2 : index
    %c0_10 = arith.constant 0 : index
    %c0_11 = arith.constant 0 : index
    %14 = vector.load %arg4[%c2, %c0_10, %c0_11] : memref<4x8x4xf32, #tpu.memory_space<vmem>>, vector<1x8x4xf32>
    %15 = vector.shape_cast %14 : vector<1x8x4xf32> to vector<8x4xf32>
    %cst_12 = arith.constant dense<0.000000e+00> : vector<8x1024xf32>
    %16 = tpu.matmul %15, %1, %cst_12 {dimension_numbers = #tpu.dot_dimension_numbers<[1], [0], [0], [1], [0, 0, 1, 1], [], []>} : vector<8x4xf32>, vector<4x1024xf32>, vector<8x1024xf32> -> vector<8x1024xf32>
    %c2_i32 = arith.constant 2 : i32
    %17 = vector.broadcast %c2_i32 : i32 to vector<1x1024xi32>
    %18 = arith.cmpi eq, %2, %17 : vector<1x1024xi32>
    %19 = vector.shape_cast %18 : vector<1x1024xi1> to vector<1x1024xi1>
    %20 = vector.broadcast %19 : vector<1x1024xi1> to vector<8x1024xi1>
    %21 = arith.select %20, %16, %13 : vector<8x1024xi1>, vector<8x1024xf32>
    %c3 = arith.constant 3 : index
    %c0_13 = arith.constant 0 : index
    %c0_14 = arith.constant 0 : index
    %22 = vector.load %arg4[%c3, %c0_13, %c0_14] : memref<4x8x4xf32, #tpu.memory_space<vmem>>, vector<1x8x4xf32>
    %23 = vector.shape_cast %22 : vector<1x8x4xf32> to vector<8x4xf32>
    %cst_15 = arith.constant dense<0.000000e+00> : vector<8x1024xf32>
    %24 = tpu.matmul %23, %1, %cst_15 {dimension_numbers = #tpu.dot_dimension_numbers<[1], [0], [0], [1], [0, 0, 1, 1], [], []>} : vector<8x4xf32>, vector<4x1024xf32>, vector<8x1024xf32> -> vector<8x1024xf32>
    %c3_i32 = arith.constant 3 : i32
    %25 = vector.broadcast %c3_i32 : i32 to vector<1x1024xi32>
    %26 = arith.cmpi eq, %2, %25 : vector<1x1024xi32>
    %27 = vector.shape_cast %26 : vector<1x1024xi1> to vector<1x1024xi1>
    %28 = vector.broadcast %27 : vector<1x1024xi1> to vector<8x1024xi1>
    %29 = arith.select %28, %24, %21 : vector<8x1024xi1>, vector<8x1024xf32>
    %c0_16 = arith.constant 0 : index
    %c0_17 = arith.constant 0 : index
    %30 = vector.load %arg5[%c0_16, %c0_17] : memref<8x1xf32, #tpu.memory_space<vmem>>, vector<8x1xf32>
    %31 = vector.broadcast %30 : vector<8x1xf32> to vector<8x1024xf32>
    %32 = arith.addf %29, %31 : vector<8x1024xf32>
    %c0_18 = arith.constant 0 : index
    %c0_19 = arith.constant 0 : index
    %c0_20 = arith.constant 0 : index
    %33 = vector.load %arg6[%c0_18, %c0_19, %c0_20] : memref<1x8x1024xf32, #tpu.memory_space<vmem>>, vector<1x8x1024xf32>
    %34 = vector.shape_cast %33 : vector<1x8x1024xf32> to vector<8x1024xf32>
    %35 = vector.shape_cast %32 : vector<8x1024xf32> to vector<1x8x1024xf32>
    tpu.vector_store %arg6[%c0_18, %c0_19, %c0_20], %35 {strides = array<i32>} : memref<1x8x1024xf32, #tpu.memory_space<vmem>>, vector<1x8x1024xf32>,
    return
  }
  func.func @transform_0(%arg0: i32, %arg1: i32) -> (i32, i32) {
    %c0_i32 = arith.constant 0 : i32
    %c0_i32_0 = arith.constant 0 : i32
    return %c0_i32, %arg1 : i32, i32
  }
  func.func @transform_1(%arg0: i32, %arg1: i32) -> (i32, i32, i32) {
    %c0_i32 = arith.constant 0 : i32
    %c0_i32_0 = arith.constant 0 : i32
    return %arg0, %c0_i32, %arg1 : i32, i32, i32
  }
  func.func @transform_2(%arg0: i32, %arg1: i32) -> (i32, i32, i32) {
    %c0_i32 = arith.constant 0 : i32
    %c0_i32_0 = arith.constant 0 : i32
    %c0_i32_1 = arith.constant 0 : i32
    %c0_i32_2 = arith.constant 0 : i32
    return %c0_i32, %c0_i32_0, %c0_i32_1 : i32, i32, i32
  }
  func.func @transform_3(%arg0: i32, %arg1: i32) -> (i32, i32) {
    %c0_i32 = arith.constant 0 : i32
    %c0_i32_0 = arith.constant 0 : i32
    %c0_i32_1 = arith.constant 0 : i32
    return %c0_i32, %c0_i32_0 : i32, i32
  }
  func.func @transform_4(%arg0: i32, %arg1: i32) -> (i32, i32, i32) {
    %c0_i32 = arith.constant 0 : i32
    %c0_i32_0 = arith.constant 0 : i32
    return %arg0, %c0_i32, %arg1 : i32, i32, i32
  }
}

</mosaic_0001>

<bundles_post_ra>
// kernel: upsample_deconv2x.1
= control target key start
LH: loop header
LB: loop body
LE: loop exit
PB: predicated region body
PF: predicated region fallthrough
CT: control target
= control target key end

     0   :  { %s1860_s15 = smov 0   ;;  %s1862_s16 = smov 0   ;;  %s2180_s0 = inlined_call_operand.vmem [shape: s32[1,1024], index: 0, kind: input, shape index: {}]   ;;  %s2181_s1 = inlined_call_operand.vmem [shape: f32[2,4,1024], index: 1, kind: input, shape index: {}]   ;;  %s2182_s2 = inlined_call_operand.vmem [shape: f32[4,8,4], index: 2, kind: input, shape index: {}]   ;;  %s2183_s3 = inlined_call_operand.vmem [shape: f32[8,1], index: 3, kind: input, shape index: {}]   ;;  %s2184_s4 = inlined_call_operand.vmem [shape: f32[2,8,1024], index: 4, kind: output, shape index: {}]  }
   0x1   :  { %s1864_s17 = smov 0  }
   0x2 LB: > { %s26_s18 = sadd.s32 1, %s1827_s16  ;;  %p1718_p0 = scmp.ge.s32.totalorder %s1831_s17, 1  ;;  %s1831_s17 = sphi %s1864_s17, %s14_s17   ;;  %s1827_s16 = sphi %s1862_s16, %s2220_s16   ;;  %s1823_s15 = sphi %s1860_s15, %s2219_s15  }
   0x3   : > { %p28_p1 = scmp.ge.s32.totalorder %s26_s18, 2  ;;  %p193_p2 = scmp.lt.s32.totalorder %s1831_s17, 3 }
   0x5   : > { %s2222_s18 = smov (%p28_p1, %s26_s18), 0  ;;  %p194_p3 = pnand %p1718_p0, %p193_p2 }
   0x6   : > { %p237_p4 = scmp.lt.s32.totalorder (!%p194_p3), %s1823_s15, 1  ;;  %v1833_v0 = vmov (!%p194_p3), 0.0   ;;  %v1592_v1 = vld [vmem:[%s2183_s3] sm:$0xff] (!%p194_p3)  ;;  %v1834_v2 = vmov (!%p194_p3), 0   ;;  %vm274_vm0 = vcmask (!%p194_p3), 1043456   ;;  %vm270_vm1 = vcmask (!%p194_p3), 31744  }
   0x7   : > { %197 = sbr.rel (%p194_p3) target bundleno = 267 (0x10b), region = 36  ;;  %355 = vmatprep.mubr.f32.mxu0 (!%p194_p3), %v1833_v0  ;;  %426 = vmatprep.mubr.f32.mxu1 (!%p194_p3), %v1833_v0  ;;  %v261_v9 = vld [vmem:[%s2182_s2] sm:$0xff] (!%p194_p3)  ;;  %v1735_v12 = vld [vmem:[%s2182_s2 + $0x8] sm:$0xff] (!%p194_p3)  ;;  %v1748_v13 = vld [vmem:[%s2182_s2 + $0x10] sm:$0xff] (!%p194_p3)  ;;  %v866_v15 = vlaneseq (!%p194_p3) }
   0x8   : > { %1804 = vset.pattern.permute.xlu0 (!%p194_p3), %v1834_v2  ;;  %v1761_v14 = vld [vmem:[%s2182_s2 + $0x18] sm:$0xff] (!%p194_p3)  ;;  %v1983_v16 = vld [vmem:[%s2180_s0] sm:$0xff] (!%p194_p3) }
   0x9   : > { %1595 = vperm.xlu0 (!%p194_p3), %1804, %v1592_v1   ;;  %v867_v17 = vshrl.u32 (!%p194_p3), %v866_v15, 7  ;;  %vm864_vm2 = vcmp.eq.s32.totalorder (!%p194_p3), %v1983_v16, 1  ;;  %vm1203_vm3 = vcmp.eq.s32.totalorder (!%p194_p3), %v1983_v16, 2  ;;  %vm1542_vm13 = vcmp.eq.s32.totalorder (!%p194_p3), %v1983_v16, 3 }
   0xa   : > { %v865_v20 = vsel (!%p194_p3), %vm864_vm2, 1, %v1834_v2  ;;  %v1204_v41 = vsel (!%p194_p3), %vm1203_vm3, 1, %v1834_v2 }
   0xb   : > { %v1986_v18 = vsub.s32 (!%p194_p3), 0, %v867_v17  ;;  %v1988_v19 = vsub.s32 (!%p194_p3), 2, %v867_v17  ;;  %v1991_v21 = vsub.s32 (!%p194_p3), 1, %v867_v17  ;;  %v1993_v22 = vsub.s32 (!%p194_p3), 3, %v867_v17 }
   0xc   : > { %v2003_v27 = vsub.s32 (!%p194_p3), 4, %v867_v17  ;;  %v2005_v28 = vsub.s32 (!%p194_p3), 6, %v867_v17  ;;  %v2012_v33 = vsub.s32 (!%p194_p3), 5, %v867_v17  ;;  %v2014_v34 = vsub.s32 (!%p194_p3), 7, %v867_v17 }
   0xd   : > { %v869_v29 = vrot.slane (!%p194_p3), %v865_v20, %v1986_v18  ;;  %v877_v30 = vrot.slane (!%p194_p3), %v865_v20, %v1988_v19  ;;  %v873_v31 = vrot.slane (!%p194_p3), %v865_v20, %v1991_v21  ;;  %v881_v32 = vrot.slane (!%p194_p3), %v865_v20, %v1993_v22 }
   0xe   : > { %s2224_s15 = smov (!%p237_p4, %s1823_s15), 1  ;;  %v885_v39 = vrot.slane %v865_v20, %v2003_v27  ;;  %v893_v40 = vrot.slane %v865_v20, %v2005_v28  ;;  %v889_v46 = vrot.slane %v865_v20, %v2012_v33  ;;  %v897_v47 = vrot.slane %v865_v20, %v2014_v34 }
   0xf   : > { %s1776_s21 = sshll.u32 %s2224_s15, 5  ;;  %vm2027_vm4 = vcmp.eq.s32.totalorder %v869_v29, 1  ;;  %vm2031_vm5 = vcmp.eq.s32.totalorder %v877_v30, 1  ;;  %vm2035_vm6 = vcmp.eq.s32.totalorder %v873_v31, 1  ;;  %vm2039_vm7 = vcmp.eq.s32.totalorder %v881_v32, 1  ;;  %s1777_s9 = sshll.u32 %s2224_s15, 6 }
  0x10   : > { %s244_s24 = scalar_lea.vmem %s2181_s1, %s1776_s21  ;;  %v1208_v50 = vrot.slane %v1204_v41, %v1986_v18  ;;  %vm2052_vm8 = vcmp.eq.s32.totalorder %v885_v39, 1  ;;  %vm2056_vm9 = vcmp.eq.s32.totalorder %v893_v40, 1  ;;  %v1216_v59 = vrot.slane %v1204_v41, %v1988_v19  ;;  %s2129_s12 = scalar_lea.vmem %s2184_s4, %s1777_s9 }
  0x11   : > { %v256_v3 = vld [vmem:[%s244_s24] sm:$0xff]  ;;  %v257_v4 = vld [vmem:[%s244_s24 + $0x8] sm:$0xff]  ;;  %v1890_v5 = vld [vmem:[%s244_s24 + $0x10] sm:$0xff]  ;;  %v1212_v60 = vrot.slane %v1204_v41, %v1991_v21  ;;  %vm2068_vm10 = vcmp.eq.s32.totalorder %v889_v46, 1  ;;  %vm2072_vm11 = vcmp.eq.s32.totalorder %v897_v47, 1  ;;  %v1220_v63 = vrot.slane %v1204_v41, %v1993_v22 }
  0x12   : > { %v266_v6 = vcombine.high %v256_v3, %v256_v3  ;;  %v267_v7 = vcombine.high %v257_v4, %v257_v4  ;;  %v1892_v8 = vld [vmem:[%s244_s24 + $0x18] sm:$0xff]  ;;  %v268_v10 = vcombine.high %v1890_v5, %v1890_v5  ;;  %vm2077_vm12 = vcmp.eq.s32.totalorder %v1208_v50, 1 }
  0x13   : > { %v269_v11 = vcombine.high %v1892_v8, %v1892_v8  ;;  %vm1239_vm14 = vcmp.eq.s32.totalorder %v1216_v59, 1  ;;  %vm1238_vm15 = vcmp.eq.s32.totalorder %v1212_v60, 1 }
  0x14   : > { %1723 = vmatprep.subr.msk.mxu0 %vm274_vm0, %v266_v6  ;;  %1726 = vmatprep.subr.msk.mxu1 %vm274_vm0, %v267_v7 }
  0x15   : > { %1724 = vmatpush1.msk.msra.mxu0 %vm274_vm0, %v256_v3  ;;  %1727 = vmatpush1.msk.msra.mxu1 %vm274_vm0, %v257_v4 }
  0x16   : > { %1725 = vmatmul.mubr.msk.f32.vlgmr.msra.gmra.mrb[0].mxu0 %vm270_vm1, %v261_v9  ;;  %1728 = vmatmul.mubr.msk.f32.vlgmr.msra.gmra.mrb[0].mxu1 %vm270_vm1, %v261_v9 }
  0x17   : > { %1729 = vmatprep.subr.msk.mxu0 %vm274_vm0, %v268_v10  ;;  %1732 = vmatprep.subr.msk.mxu1 %vm274_vm0, %v269_v11 }
  0x18   : > { %1730 = vmatpush1.msk.msra.mxu0 %vm274_vm0, %v1890_v5  ;;  %1733 = vmatpush1.msk.msra.mxu1 %vm274_vm0, %v1892_v8 }
  0x19   : > { %497 = vmatprep.mubr.f32.mxu0 %v1833_v0  ;;  %568 = vmatprep.mubr.f32.mxu1 %v1833_v0 }
  0x1a   : > { %1731 = vmatmul.mubr.msk.f32.vlgmr.msra.gmra.mrb[2].mxu0 %vm270_vm1, %v261_v9  ;;  %1734 = vmatmul.mubr.msk.f32.vlgmr.msra.gmra.mrb[2].mxu1 %vm270_vm1, %v261_v9  ;;  %v1232_v9 = vrot.slane %v1204_v41, %v2005_v28 }
  0x1b   : > { %1736 = vmatprep.subr.msk.mxu0 %vm274_vm0, %v266_v6  ;;  %1739 = vmatprep.subr.msk.mxu1 %vm274_vm0, %v267_v7 }
  0x1c   : > { %1737 = vmatpush1.msk.msra.mxu0 %vm274_vm0, %v256_v3  ;;  %1740 = vmatpush1.msk.msra.mxu1 %vm274_vm0, %v257_v4  ;;  %vm1243_vm2 = vcmp.eq.s32.totalorder %v1232_v9, 1 }
  0x1d   : > { %644 = vmatprep.mubr.f32.mxu0 %v1833_v0  ;;  %715 = vmatprep.mubr.f32.mxu1 %v1833_v0 }
  0x1e   : > { %1738 = vmatmul.mubr.msk.f32.vlgmr.msra.gmra.mrb[4].mxu0 %vm270_vm1, %v1735_v12  ;;  %1741 = vmatmul.mubr.msk.f32.vlgmr.msra.gmra.mrb[4].mxu1 %vm270_vm1, %v1735_v12 }
  0x1f   : > { %1742 = vmatprep.subr.msk.mxu0 %vm274_vm0, %v268_v10  ;;  %1745 = vmatprep.subr.msk.mxu1 %vm274_vm0, %v269_v11 }
  0x20   : > { %1743 = vmatpush1.msk.msra.mxu0 %vm274_vm0, %v1890_v5  ;;  %1746 = vmatpush1.msk.msra.mxu1 %vm274_vm0, %v1892_v8 }
  0x21   : > { %786 = vmatprep.mubr.f32.mxu0 %v1833_v0  ;;  %857 = vmatprep.mubr.f32.mxu1 %v1833_v0 }
  0x22   : > { %1744 = vmatmul.mubr.msk.f32.vlgmr.msra.gmra.mrb[6].mxu0 %vm270_vm1, %v1735_v12  ;;  %1747 = vmatmul.mubr.msk.f32.vlgmr.msra.gmra.mrb[6].mxu1 %vm270_vm1, %v1735_v12  ;;  %v1228_v12 = vrot.slane %v1204_v41, %v2012_v33 }
  0x23   : > { %1749 = vmatprep.subr.msk.mxu0 %vm274_vm0, %v266_v6  ;;  %1752 = vmatprep.subr.msk.mxu1 %vm274_vm0, %v267_v7 }
  0x24   : > { %1750 = vmatpush1.msk.msra.mxu0 %vm274_vm0, %v256_v3  ;;  %1753 = vmatpush1.msk.msra.mxu1 %vm274_vm0, %v257_v4  ;;  %vm1242_vm3 = vcmp.eq.s32.totalorder %v1228_v12, 1 }
  0x25   : > { %983 = vmatprep.mubr.f32.mxu0 %v1833_v0  ;;  %1054 = vmatprep.mubr.f32.mxu1 %v1833_v0 }
  0x26   : > { %1751 = vmatmul.mubr.msk.f32.vlgmr.msra.gmra.mrb[8].mxu0 %vm270_vm1, %v1748_v13  ;;  %1754 = vmatmul.mubr.msk.f32.vlgmr.msra.gmra.mrb[8].mxu1 %vm270_vm1, %v1748_v13 }
  0x27   : > { %1755 = vmatprep.subr.msk.mxu0 %vm274_vm0, %v268_v10  ;;  %1758 = vmatprep.subr.msk.mxu1 %vm274_vm0, %v269_v11 }
  0x28   : > { %1756 = vmatpush1.msk.msra.mxu0 %vm274_vm0, %v1890_v5  ;;  %1759 = vmatpush1.msk.msra.mxu1 %vm274_vm0, %v1892_v8 }
  0x29   : > { %1125 = vmatprep.mubr.f32.mxu0 %v1833_v0  ;;  %1196 = vmatprep.mubr.f32.mxu1 %v1833_v0 }
  0x2a   : > { %1757 = vmatmul.mubr.msk.f32.vlgmr.msra.gmra.mrb[10].mxu0 %vm270_vm1, %v1748_v13  ;;  %1760 = vmatmul.mubr.msk.f32.vlgmr.msra.gmra.mrb[10].mxu1 %vm270_vm1, %v1748_v13  ;;  %v1236_v13 = vrot.slane %v1204_v41, %v2014_v34 }
  0x2b   : > { %1762 = vmatprep.subr.msk.mxu0 %vm274_vm0, %v266_v6  ;;  %1765 = vmatprep.subr.msk.mxu1 %vm274_vm0, %v267_v7 }
  0x2c   : > { %1763 = vmatpush1.msk.msra.mxu0 %vm274_vm0, %v256_v3  ;;  %1766 = vmatpush1.msk.msra.mxu1 %vm274_vm0, %v257_v4 }
  0x2d   : > { %1322 = vmatprep.mubr.f32.mxu0 %v1833_v0  ;;  %1393 = vmatprep.mubr.f32.mxu1 %v1833_v0 }
  0x2e   : > { %1764 = vmatmul.mubr.msk.f32.vlgmr.msra.gmra.mrb[12].mxu0 %vm270_vm1, %v1761_v14  ;;  %1767 = vmatmul.mubr.msk.f32.vlgmr.msra.gmra.mrb[12].mxu1 %vm270_vm1, %v1761_v14 }
  0x2f   : > { %1768 = vmatprep.subr.msk.mxu0 %vm274_vm0, %v268_v10  ;;  %1771 = vmatprep.subr.msk.mxu1 %vm274_vm0, %v269_v11 }
  0x30   : > { %1769 = vmatpush1.msk.msra.mxu0 %vm274_vm0, %v1890_v5  ;;  %1772 = vmatpush1.msk.msra.mxu1 %vm274_vm0, %v1892_v8  ;;  %v1224_v8 = vrot.slane %v1204_v41, %v2003_v27  ;;  %vm1240_vm0 = vcmp.eq.s32.totalorder %v1220_v63, 1 }
  0x31   : > { %1464 = vmatprep.mubr.f32.mxu0 %v1833_v0  ;;  %1535 = vmatprep.mubr.f32.mxu1 %v1833_v0 }
  0x32   : > { %1770 = vmatmul.mubr.msk.f32.vlgmr.msra.gmra.mrb[14].mxu0 %vm270_vm1, %v1761_v14  ;;  %1773 = vmatmul.mubr.msk.f32.vlgmr.msra.gmra.mrb[14].mxu1 %vm270_vm1, %v1761_v14  ;;  %v1543_v14 = vsel %vm1542_vm13, 1, %v1834_v2  ;;  %vm1241_vm1 = vcmp.eq.s32.totalorder %v1224_v8, 1 }
  0x33   : > { %v1547_v29 = vrot.slane %v1543_v14, %v1986_v18  ;;  %v1555_v30 = vrot.slane %v1543_v14, %v1988_v19  ;;  %v1551_v2 = vrot.slane %v1543_v14, %v1991_v21  ;;  %v1559_v31 = vrot.slane %v1543_v14, %v1993_v22 }
  0x34   : > { %v1563_v40 = vrot.slane %v1543_v14, %v2003_v27  ;;  %v1571_v41 = vrot.slane %v1543_v14, %v2005_v28  ;;  %v1567_v28 = vrot.slane %v1543_v14, %v2012_v33  ;;  %v1575_v44 = vrot.slane %v1543_v14, %v2014_v34 }
  0x88   : > { %v1596_v22 = vpop.permute.xlu0 %1595 }
  0xe9   : > { %v1995_v23 = vpop.f32.mrb[0].mxu0  ;;  %v1997_v24 = vpop.f32.mrb[0].mxu1 }
  0xea   : > { %v1999_v25 = vpop.f32.mrb[1].mxu0  ;;  %v2001_v26 = vpop.f32.mrb[1].mxu1 }
  0xed   : > { %v2016_v35 = vpop.f32.mrb[2].mxu0  ;;  %v2018_v36 = vpop.f32.mrb[2].mxu1 }
  0xee   : > { %v2020_v37 = vpop.f32.mrb[3].mxu0  ;;  %v2022_v38 = vpop.f32.mrb[3].mxu1 }
  0xf1   : > { %v646_v48 = vpop.f32.mrb[4].mxu0  ;;  %v717_v49 = vpop.f32.mrb[4].mxu1 }
  0xf2   : > { %v906_v51 = vsel %vm2027_vm4, %v646_v48, %v1995_v23  ;;  %v908_v52 = vsel %vm2031_vm5, %v717_v49, %v1997_v24  ;;  %v648_v53 = vpop.f32.mrb[5].mxu0  ;;  %v719_v54 = vpop.f32.mrb[5].mxu1  ;;  %vm1244_vm4 = vcmp.eq.s32.totalorder %v1236_v13, 1  ;;  %vm2108_vm5 = vcmp.eq.s32.totalorder %v1547_v29, 1 }
  0xf3   : > { %v907_v57 = vsel %vm2035_vm6, %v648_v53, %v1999_v25  ;;  %v909_v58 = vsel %vm2039_vm7, %v719_v54, %v2001_v26  ;;  %vm2112_vm6 = vcmp.eq.s32.totalorder %v1555_v30, 1  ;;  %vm2116_vm7 = vcmp.eq.s32.totalorder %v1551_v2, 1 }
  0xf5   : > { %v788_v0 = vpop.f32.mrb[6].mxu0  ;;  %v859_v1 = vpop.f32.mrb[6].mxu1 }
  0xf6   : > { %v910_v4 = vsel %vm2052_vm8, %v788_v0, %v2016_v35  ;;  %v912_v5 = vsel %vm2056_vm9, %v859_v1, %v2018_v36  ;;  %v790_v6 = vpop.f32.mrb[7].mxu0  ;;  %v861_v7 = vpop.f32.mrb[7].mxu1  ;;  %vm2120_vm8 = vcmp.eq.s32.totalorder %v1559_v31, 1  ;;  %vm2135_vm9 = vcmp.eq.s32.totalorder %v1563_v40, 1 }
  0xf7   : > { %v911_v10 = vsel %vm2068_vm10, %v790_v6, %v2020_v37  ;;  %v913_v11 = vsel %vm2072_vm11, %v861_v7, %v2022_v38  ;;  %vm2139_vm10 = vcmp.eq.s32.totalorder %v1571_v41, 1  ;;  %vm2147_vm11 = vcmp.eq.s32.totalorder %v1567_v28, 1 }
  0xf9   : > { %v985_v15 = vpop.f32.mrb[8].mxu0  ;;  %v1056_v16 = vpop.f32.mrb[8].mxu1 }
  0xfa   : > { %v1245_v17 = vsel %vm2077_vm12, %v985_v15, %v906_v51  ;;  %v1247_v20 = vsel %vm1239_vm14, %v1056_v16, %v908_v52  ;;  %v987_v23 = vpop.f32.mrb[9].mxu0  ;;  %v1058_v24 = vpop.f32.mrb[9].mxu1  ;;  %vm2151_vm12 = vcmp.eq.s32.totalorder %v1575_v44, 1 }
  0xfb   : > { %v1246_v25 = vsel %vm1238_vm15, %v987_v23, %v907_v57  ;;  %v1248_v26 = vsel %vm1240_vm0, %v1058_v24, %v909_v58 }
  0xfd   : > { %v1127_v32 = vpop.f32.mrb[10].mxu0  ;;  %v1198_v35 = vpop.f32.mrb[10].mxu1 }
  0xfe   : > { %v1249_v36 = vsel %vm1241_vm1, %v1127_v32, %v910_v4  ;;  %v1251_v37 = vsel %vm1243_vm2, %v1198_v35, %v912_v5  ;;  %v1129_v38 = vpop.f32.mrb[11].mxu0  ;;  %v1200_v39 = vpop.f32.mrb[11].mxu1 }
  0xff   : > { %v1250_v18 = vsel %vm1242_vm3, %v1129_v38, %v911_v10  ;;  %v1252_v42 = vsel %vm1244_vm4, %v1200_v39, %v913_v11 }
 0x101   : > { %v1324_v45 = vpop.f32.mrb[12].mxu0  ;;  %v1395_v46 = vpop.f32.mrb[12].mxu1 }
 0x102   : > { %v1584_v47 = vsel %vm2108_vm5, %v1324_v45, %v1245_v17  ;;  %v1586_v48 = vsel %vm2112_vm6, %v1395_v46, %v1247_v20  ;;  %v1326_v49 = vpop.f32.mrb[13].mxu0  ;;  %v1397_v33 = vpop.f32.mrb[13].mxu1 }
 0x103   : > { %v1598_v51 = vadd.f32 %v1596_v22, %v1584_v47  ;;  %v1600_v52 = vadd.f32 %v1596_v22, %v1586_v48  ;;  %v1585_v53 = vsel %vm2116_vm7, %v1326_v49, %v1246_v25  ;;  %v1587_v54 = vsel %vm2120_vm8, %v1397_v33, %v1248_v26 }
 0x104   : > { %v1599_v55 = vadd.f32 %v1596_v22, %v1585_v53  ;;  %v1601_v56 = vadd.f32 %v1596_v22, %v1587_v54 }
 0x105   : > { %1606 = vst [vmem:[%s2129_s12] sm:$0xff] %v1598_v51  ;;  %1608 = vst [vmem:[%s2129_s12 + $0x10] sm:$0xff] %v1600_v52  ;;  %v1466_v59 = vpop.f32.mrb[14].mxu0  ;;  %v1537_v60 = vpop.f32.mrb[14].mxu1 }
 0x106   : > { %1607 = vst [vmem:[%s2129_s12 + $0x8] sm:$0xff] %v1599_v55  ;;  %1609 = vst [vmem:[%s2129_s12 + $0x18] sm:$0xff] %v1601_v56  ;;  %v1588_v61 = vsel %vm2135_vm9, %v1466_v59, %v1249_v36  ;;  %v1590_v62 = vsel %vm2139_vm10, %v1537_v60, %v1251_v37  ;;  %v1468_v63 = vpop.f32.mrb[15].mxu0  ;;  %v1539_v0 = vpop.f32.mrb[15].mxu1 }
 0x107   : > { %v1602_v1 = vadd.f32 %v1596_v22, %v1588_v61  ;;  %v1604_v3 = vadd.f32 %v1596_v22, %v1590_v62  ;;  %v1589_v4 = vsel %vm2147_vm11, %v1468_v63, %v1250_v18  ;;  %v1591_v5 = vsel %vm2151_vm12, %v1539_v0, %v1252_v42 }
 0x108   : > { %v1603_v6 = vadd.f32 %v1596_v22, %v1589_v4  ;;  %v1605_v7 = vadd.f32 %v1596_v22, %v1591_v5 }
 0x109   : > { %1610 = vst [vmem:[%s2129_s12 + $0x20] sm:$0xff] %v1602_v1  ;;  %1612 = vst [vmem:[%s2129_s12 + $0x30] sm:$0xff] %v1604_v3 }
 0x10a   : > { %1611 = vst [vmem:[%s2129_s12 + $0x28] sm:$0xff] %v1603_v6  ;;  %1613 = vst [vmem:[%s2129_s12 + $0x38] sm:$0xff] %v1605_v7 }
 0x10b PF: > { %s14_s17 = sadd.s32 1, %s1831_s17   ;;  %s2219_s15 = smov %s1827_s16 }
 0x10c   : > { %p11_p5 = scmp.ge.s32.totalorder %s14_s17, 4   ;;  %s2220_s16 = smov %s2222_s18 }
 0x10e   :  { %13 = sbr.rel (!%p11_p5) target bundleno = 2 (0x2), region = 72 }

</bundles_post_ra>
